<compile_context>
chip_gen: v7x
topology: tpu7x:2x2x1
jax: 0.10.0
libtpu: 0.0.40
codegen_flags: <defaults>
</compile_context>

<pallas_src>
import math
import functools

import jax
import jax.numpy as jnp
from jax import lax
from jax.experimental import pallas as pl
from jax.experimental.pallas import tpu as pltpu

# ----------------------------- small config ---------------------------------
EMBED_DIM = 32          # decoder_config.embed_dim
HEAD_NUM = 4            # decoder_config.head_num
KV_HEAD_NUM = 2         # decoder_config.query_group_num
HEAD_DIM = EMBED_DIM // HEAD_NUM          # 8
REP_TIMES = HEAD_NUM // KV_HEAD_NUM       # 2  (MODEL_PARALLEL_NUM = 1)
BATCH = 2
SEQ = 8


# ----------------------------- fused Pallas kernel ---------------------------
def _fused_attention_kernel(x_ref, w_fused_ref, wo_ref, cos_ref, sin_ref,
                            o_ref, *, batch, seq, head_num, kv_head_num,
                            head_dim):
    qn = head_num * head_dim           # 32
    kvn = kv_head_num * head_dim       # 16
    rep = head_num // kv_head_num
    d_out = wo_ref.shape[1]

    # Single fused MXU matmul:
    #   (B*S, D) @ (D, qn + kvn + kvn + qn + kvn)
    #   -> [q_scaled | k | v | q_swap_scaled | k_swap]
    x = x_ref[...].astype(jnp.float32)
    qkv = jnp.dot(x, w_fused_ref[...], preferred_element_type=jnp.float32)

    qk = qkv[:, :qn + kvn]                     # (B*S, 48)  q | k
    v = qkv[:, qn + kvn:qn + 2 * kvn]          # (B*S, 16)
    qk_swap = qkv[:, qn + 2 * kvn:]            # (B*S, 48)  swap(q) | swap(k)

    # Interleaved (Llama) rotary: pair-swap already baked into the weights,
    # so this is two VPU elementwise FMAs.
    qk_rot = qk * cos_ref[...] + qk_swap * sin_ref[...]
    q = qk_rot[:, :qn]                         # scaled by 1/sqrt(head_dim)
    k = qk_rot[:, qn:]

    # Causal mask (shared across heads/batches).
    row = lax.broadcasted_iota(jnp.int32, (seq, seq), 0)
    col = lax.broadcasted_iota(jnp.int32, (seq, seq), 1)
    causal = col <= row
    neg_big = jnp.float32(-1e30)

    # q @ k^T via contraction on the last dims (no XLU transpose).
    dn_qk = (((1,), (1,)), ((), ()))

    # Wo row-slices, loaded once (static ref slices).
    wo_slices = [wo_ref[h * head_dim:(h + 1) * head_dim, :]
                 for h in range(head_num)]

    # GQA attention, fully unrolled (tiny tiles); repeat_kv never materialized:
    # each KV head slice is reused by its `rep` query heads.
    for b in range(batch):
        r0 = b * seq
        out_b = jnp.zeros((seq, d_out), dtype=jnp.float32)
        for kvh in range(kv_head_num):
            kb = k[r0:r0 + seq, kvh * head_dim:(kvh + 1) * head_dim]   # (S, HD)
            vb = v[r0:r0 + seq, kvh * head_dim:(kvh + 1) * head_dim]   # (S, HD)
            for r in range(rep):
                h = kvh * rep + r
                qb = q[r0:r0 + seq, h * head_dim:(h + 1) * head_dim]   # (S, HD)

                s = lax.dot_general(qb, kb, dn_qk,
                                    preferred_element_type=jnp.float32)
                s = jnp.where(causal, s, neg_big)

                # numerically stable f32 softmax (matches F.softmax(scores.float()))
                m = jnp.max(s, axis=-1, keepdims=True)
                p = jnp.exp(s - m)
                denom = jnp.sum(p, axis=-1, keepdims=True)

                pv = jnp.dot(p, vb, preferred_element_type=jnp.float32)
                pv = pv * pl.reciprocal(denom, approx=False)

                # dropout is identity in inference mode; output projection is
                # distributed over per-head Wo slices (no lane concat).
                out_b = out_b + jnp.dot(pv, wo_slices[h],
                                        preferred_element_type=jnp.float32)
        o_ref[r0:r0 + seq, :] = out_b.astype(o_ref.dtype)


# ----------------------------- host-side fusion ------------------------------
def _pair_swap_matrix(n):
    """(n, n) f32 matrix P with (x @ P)[:, 2i] = -x[:, 2i+1],
    (x @ P)[:, 2i+1] = +x[:, 2i]  (interleaved rotary pair swap)."""
    i = jnp.arange(n)
    r, c = i[:, None], i[None, :]
    plus = jnp.logical_and(c == r + 1, (r % 2) == 0).astype(jnp.float32)
    minus = jnp.logical_and(c == r - 1, (r % 2) == 1).astype(jnp.float32)
    return plus - minus


def precompute_freqs_cis(seq_len, head_dim, theta=10000.0):
    freqs = 1.0 / (theta ** (jnp.arange(0, head_dim, 2, dtype=jnp.float32) / head_dim))
    t = jnp.arange(seq_len, dtype=jnp.float32)
    angles = jnp.outer(t, freqs)                       # (S, HD/2)
    return jnp.cos(angles), jnp.sin(angles)


def fuse_attention_params(wq, wk, wv, cos, sin, batch):
    """Fold the rotary pair-swap and 1/sqrt(head_dim) into the projection
    weights, fuse Wq/Wk/Wv into one matrix, pre-expand cos/sin."""
    scale = 1.0 / math.sqrt(HEAD_DIM)
    wq_s = wq * scale
    p_q = _pair_swap_matrix(wq.shape[1])
    p_k = _pair_swap_matrix(wk.shape[1])
    w_fused = jnp.concatenate([wq_s, wk, wv, wq_s @ p_q, wk @ p_k], axis=1)

    cos_hd = jnp.repeat(cos, 2, axis=-1)               # (S, HD): c0 c0 c1 c1 ...
    sin_hd = jnp.repeat(sin, 2, axis=-1)
    cos_qk = jnp.concatenate([jnp.tile(cos_hd, (batch, HEAD_NUM)),
                              jnp.tile(cos_hd, (batch, KV_HEAD_NUM))], axis=1)
    sin_qk = jnp.concatenate([jnp.tile(sin_hd, (batch, HEAD_NUM)),
                              jnp.tile(sin_hd, (batch, KV_HEAD_NUM))], axis=1)
    return w_fused, cos_qk, sin_qk


@jax.jit
def _attention_pallas(x, w_fused, wo, cos_qk, sin_qk):
    b, s, d = x.shape
    x2d = x.reshape(b * s, d)

    kernel = functools.partial(
        _fused_attention_kernel,
        batch=b, seq=s, head_num=HEAD_NUM, kv_head_num=KV_HEAD_NUM,
        head_dim=HEAD_DIM)

    full = lambda shape: pl.BlockSpec(shape, lambda i: (0, 0))
    out2d = pl.pallas_call(
        kernel,
        out_shape=jax.ShapeDtypeStruct((b * s, d), x.dtype),
        grid=(1,),
        in_specs=[
            full(x2d.shape),
            full(w_fused.shape),
            full(wo.shape),
            full(cos_qk.shape),
            full(sin_qk.shape),
        ],
        out_specs=full((b * s, d)),
        compiler_params=pltpu.CompilerParams(
            dimension_semantics=("arbitrary",)),
    )(x2d, w_fused, wo, cos_qk, sin_qk)
    return out2d.reshape(b, s, d)


def attention_forward(x, wq, wk, wv, wo, cos, sin):
    """Equivalent of Attention.forward(x, freqs_cis, use_kv_cache=False)."""
    # TODO(synk): KV-cache path (use_kv_cache=True / cache concat) not implemented.
    b = x.shape[0]
    w_fused, cos_qk, sin_qk = fuse_attention_params(wq, wk, wv, cos, sin, b)
    out = _attention_pallas(x, w_fused, wo, cos_qk, sin_qk)
    # Dropout_output is identity in eval mode; (output, cache_k, cache_v).
    return out, None, None


# ----------------------------- reference (pure JAX) ---------------------------
def apply_rotary_emb_ref(xq, xk, cos, sin):
    def rot(x):
        b, s, h, hd = x.shape
        xr = x.reshape(b, s, h, hd // 2, 2)
        xe, xo = xr[..., 0], xr[..., 1]
        c = cos[None, :, None, :]
        si = sin[None, :, None, :]
        oe = xe * c - xo * si
        oo = xe * si + xo * c
        return jnp.stack([oe, oo], axis=-1).reshape(b, s, h, hd)
    return rot(xq), rot(xk)


def repeat_kv_ref(x, rep_times):
    b, s, kvh, hd = x.shape
    if rep_times == 1:
        return x
    x = jnp.broadcast_to(x[:, :, :, None, :], (b, s, kvh, rep_times, hd))
    return x.reshape(b, s, kvh * rep_times, hd)


def reference_forward(x, wq, wk, wv, wo, cos, sin):
    b, s, d = x.shape
    xq = (x @ wq).reshape(b, s, HEAD_NUM, HEAD_DIM)
    xk = (x @ wk).reshape(b, s, KV_HEAD_NUM, HEAD_DIM)
    xv = (x @ wv).reshape(b, s, KV_HEAD_NUM, HEAD_DIM)
    xq, xk = apply_rotary_emb_ref(xq, xk, cos, sin)
    xk = repeat_kv_ref(xk, REP_TIMES)
    xv = repeat_kv_ref(xv, REP_TIMES)
    q = jnp.transpose(xq, (0, 2, 1, 3))
    k = jnp.transpose(xk, (0, 2, 1, 3))
    v = jnp.transpose(xv, (0, 2, 1, 3))
    scores = jnp.einsum("bhqd,bhkd->bhqk", q, k) / math.sqrt(HEAD_DIM)
    mask = jnp.triu(jnp.full((s, s), -jnp.inf), k=1)
    scores = scores + mask[None, None]
    probs = jax.nn.softmax(scores, axis=-1)
    out = jnp.einsum("bhqk,bhkd->bhqd", probs, v)
    out = jnp.transpose(out, (0, 2, 1, 3)).reshape(b, s, HEAD_NUM * HEAD_DIM)
    return out @ wo


# ----------------------------- main -------------------------------------------
if __name__ == "__main__":
    key = jax.random.PRNGKey(0)
    kx, kq, kk, kv, ko = jax.random.split(key, 5)

    x = jax.random.normal(kx, (BATCH, SEQ, EMBED_DIM), dtype=jnp.float32)

    # Deterministic synthetic weights, (in, out) layout, no bias.
    def init_w(k, shape):
        fan_in = shape[0]
        return jax.random.uniform(
            k, shape, dtype=jnp.float32,
            minval=-1.0 / math.sqrt(fan_in), maxval=1.0 / math.sqrt(fan_in))

    wq = init_w(kq, (EMBED_DIM, HEAD_NUM * HEAD_DIM))
    wk = init_w(kk, (EMBED_DIM, KV_HEAD_NUM * HEAD_DIM))
    wv = init_w(kv, (EMBED_DIM, KV_HEAD_NUM * HEAD_DIM))
    wo = init_w(ko, (HEAD_NUM * HEAD_DIM, EMBED_DIM))

    cos, sin = precompute_freqs_cis(SEQ, HEAD_DIM)

    out, cache_k, cache_v = attention_forward(x, wq, wk, wv, wo, cos, sin)
    out = jax.block_until_ready(out)

    ref = reference_forward(x, wq, wk, wv, wo, cos, sin)
    assert jnp.allclose(out, ref, atol=1e-4, rtol=1e-4), "mismatch vs reference"

    print("KERNEL_OK")
</pallas_src>

<mosaic_0001>
module attributes {stable_mosaic.version = 11 : i64} {
  func.func @_fused_attention_kernel(%arg0: i32, %arg1: memref<16x32xf32, #tpu.memory_space<vmem>>, %arg2: memref<32x112xf32, #tpu.memory_space<vmem>>, %arg3: memref<32x32xf32, #tpu.memory_space<vmem>>, %arg4: memref<16x48xf32, #tpu.memory_space<vmem>>, %arg5: memref<16x48xf32, #tpu.memory_space<vmem>>, %arg6: memref<16x32xf32, #tpu.memory_space<vmem>>) attributes {dimension_semantics = [#tpu.dimension_semantics<arbitrary>], iteration_bounds = array<i64: 1>, scalar_prefetch = 0 : i64, scratch_operands = 0 : i64, tpu.core_type = #tpu.core_type<tc>, window_params = [{pipeline_mode = #tpu.pipeline_mode<synchronous>, transform_indices = @transform_0, window_bounds = array<i64: 16, 32>}, {pipeline_mode = #tpu.pipeline_mode<synchronous>, transform_indices = @transform_1, window_bounds = array<i64: 32, 112>}, {pipeline_mode = #tpu.pipeline_mode<synchronous>, transform_indices = @transform_2, window_bounds = array<i64: 32, 32>}, {pipeline_mode = #tpu.pipeline_mode<synchronous>, transform_indices = @transform_3, window_bounds = array<i64: 16, 48>}, {pipeline_mode = #tpu.pipeline_mode<synchronous>, transform_indices = @transform_4, window_bounds = array<i64: 16, 48>}, {pipeline_mode = #tpu.pipeline_mode<synchronous>, transform_indices = @transform_5, window_bounds = array<i64: 16, 32>}]} {
    %c0 = arith.constant 0 : index
    %c0_0 = arith.constant 0 : index
    %0 = vector.load %arg1[%c0, %c0_0] : memref<16x32xf32, #tpu.memory_space<vmem>>, vector<16x32xf32>
    %c0_1 = arith.constant 0 : index
    %c0_2 = arith.constant 0 : index
    %1 = vector.load %arg2[%c0_1, %c0_2] : memref<32x112xf32, #tpu.memory_space<vmem>>, vector<32x112xf32>
    %cst = arith.constant dense<0.000000e+00> : vector<16x112xf32>
    %2 = tpu.matmul %0, %1, %cst {dimension_numbers = #tpu.dot_dimension_numbers<[1], [0], [0], [1], [0, 0, 1, 1], [], []>} : vector<16x32xf32>, vector<32x112xf32>, vector<16x112xf32> -> vector<16x112xf32>
    %3 = vector.extract_strided_slice %2 {offsets = [0, 0], sizes = [16, 48], strides = [1, 1]} : vector<16x112xf32> to vector<16x48xf32>
    %4 = vector.extract_strided_slice %2 {offsets = [0, 48], sizes = [16, 16], strides = [1, 1]} : vector<16x112xf32> to vector<16x16xf32>
    %5 = vector.extract_strided_slice %2 {offsets = [0, 64], sizes = [16, 48], strides = [1, 1]} : vector<16x112xf32> to vector<16x48xf32>
    %c0_3 = arith.constant 0 : index
    %c0_4 = arith.constant 0 : index
    %6 = vector.load %arg4[%c0_3, %c0_4] : memref<16x48xf32, #tpu.memory_space<vmem>>, vector<16x48xf32>
    %7 = arith.mulf %3, %6 : vector<16x48xf32>
    %c0_5 = arith.constant 0 : index
    %c0_6 = arith.constant 0 : index
    %8 = vector.load %arg5[%c0_5, %c0_6] : memref<16x48xf32, #tpu.memory_space<vmem>>, vector<16x48xf32>
    %9 = arith.mulf %5, %8 : vector<16x48xf32>
    %10 = arith.addf %7, %9 : vector<16x48xf32>
    %11 = vector.extract_strided_slice %10 {offsets = [0, 0], sizes = [16, 32], strides = [1, 1]} : vector<16x48xf32> to vector<16x32xf32>
    %12 = vector.extract_strided_slice %10 {offsets = [0, 32], sizes = [16, 16], strides = [1, 1]} : vector<16x48xf32> to vector<16x16xf32>
    %13 = tpu.iota {dimensions = array<i32: 0>} : vector<8x8xi32>
    %14 = tpu.iota {dimensions = array<i32: 1>} : vector<8x8xi32>
    %15 = arith.cmpi sle, %14, %13 : vector<8x8xi32>
    %c0_7 = arith.constant 0 : index
    %c0_8 = arith.constant 0 : index
    %16 = vector.load %arg3[%c0_7, %c0_8] : memref<32x32xf32, #tpu.memory_space<vmem>>, vector<8x32xf32>
    %c8 = arith.constant 8 : index
    %c0_9 = arith.constant 0 : index
    %17 = vector.load %arg3[%c8, %c0_9] : memref<32x32xf32, #tpu.memory_space<vmem>>, vector<8x32xf32>
    %c16 = arith.constant 16 : index
    %c0_10 = arith.constant 0 : index
    %18 = vector.load %arg3[%c16, %c0_10] : memref<32x32xf32, #tpu.memory_space<vmem>>, vector<8x32xf32>
    %c24 = arith.constant 24 : index
    %c0_11 = arith.constant 0 : index
    %19 = vector.load %arg3[%c24, %c0_11] : memref<32x32xf32, #tpu.memory_space<vmem>>, vector<8x32xf32>
    %cst_12 = arith.constant 0.000000e+00 : f32
    %20 = vector.broadcast %cst_12 : f32 to vector<8x32xf32>
    %21 = vector.extract_strided_slice %12 {offsets = [0, 0], sizes = [8, 8], strides = [1, 1]} : vector<16x16xf32> to vector<8x8xf32>
    %22 = vector.extract_strided_slice %4 {offsets = [0, 0], sizes = [8, 8], strides = [1, 1]} : vector<16x16xf32> to vector<8x8xf32>
    %23 = vector.extract_strided_slice %11 {offsets = [0, 0], sizes = [8, 8], strides = [1, 1]} : vector<16x32xf32> to vector<8x8xf32>
    %cst_13 = arith.constant dense<0.000000e+00> : vector<8x8xf32>
    %24 = tpu.matmul %23, %21, %cst_13 {dimension_numbers = #tpu.dot_dimension_numbers<[1], [1], [0], [0], [0, 0, 1, 0], [], []>} : vector<8x8xf32>, vector<8x8xf32>, vector<8x8xf32> -> vector<8x8xf32>
    %cst_14 = arith.constant -1.000000e+30 : f32
    %25 = vector.broadcast %cst_14 : f32 to vector<8x8xf32>
    %26 = arith.select %15, %24, %25 : vector<8x8xi1>, vector<8x8xf32>
    %cst_15 = arith.constant dense<0xFF800000> : vector<8xf32>
    %27 = vector.multi_reduction <maximumf>, %26, %cst_15 [1] : vector<8x8xf32> to vector<8xf32>
    %28 = vector.shape_cast %27 : vector<8xf32> to vector<8x1xf32>
    %29 = vector.broadcast %28 : vector<8x1xf32> to vector<8x8xf32>
    %30 = arith.subf %26, %29 : vector<8x8xf32>
    %31 = math.exp %30 : vector<8x8xf32>
    %cst_16 = arith.constant dense<0.000000e+00> : vector<8xf32>
    %32 = vector.multi_reduction <add>, %31, %cst_16 [1] : vector<8x8xf32> to vector<8xf32>
    %33 = vector.shape_cast %32 : vector<8xf32> to vector<8x1xf32>
    %cst_17 = arith.constant dense<0.000000e+00> : vector<8x8xf32>
    %34 = tpu.matmul %31, %22, %cst_17 {dimension_numbers = #tpu.dot_dimension_numbers<[1], [0], [0], [1], [0, 0, 1, 1], [], []>} : vector<8x8xf32>, vector<8x8xf32>, vector<8x8xf32> -> vector<8x8xf32>
    %35 = tpu.reciprocal %33 : vector<8x1xf32> -> vector<8x1xf32>
    %36 = vector.broadcast %35 : vector<8x1xf32> to vector<8x8xf32>
    %37 = arith.mulf %34, %36 : vector<8x8xf32>
    %cst_18 = arith.constant dense<0.000000e+00> : vector<8x32xf32>
    %38 = tpu.matmul %37, %16, %cst_18 {dimension_numbers = #tpu.dot_dimension_numbers<[1], [0], [0], [1], [0, 0, 1, 1], [], []>} : vector<8x8xf32>, vector<8x32xf32>, vector<8x32xf32> -> vector<8x32xf32>
    %39 = arith.addf %20, %38 : vector<8x32xf32>
    %40 = vector.extract_strided_slice %11 {offsets = [0, 8], sizes = [8, 8], strides = [1, 1]} : vector<16x32xf32> to vector<8x8xf32>
    %cst_19 = arith.constant dense<0.000000e+00> : vector<8x8xf32>
    %41 = tpu.matmul %40, %21, %cst_19 {dimension_numbers = #tpu.dot_dimension_numbers<[1], [1], [0], [0], [0, 0, 1, 0], [], []>} : vector<8x8xf32>, vector<8x8xf32>, vector<8x8xf32> -> vector<8x8xf32>
    %cst_20 = arith.constant -1.000000e+30 : f32
    %42 = vector.broadcast %cst_20 : f32 to vector<8x8xf32>
    %43 = arith.select %15, %41, %42 : vector<8x8xi1>, vector<8x8xf32>
    %cst_21 = arith.constant dense<0xFF800000> : vector<8xf32>
    %44 = vector.multi_reduction <maximumf>, %43, %cst_21 [1] : vector<8x8xf32> to vector<8xf32>
    %45 = vector.shape_cast %44 : vector<8xf32> to vector<8x1xf32>
    %46 = vector.broadcast %45 : vector<8x1xf32> to vector<8x8xf32>
    %47 = arith.subf %43, %46 : vector<8x8xf32>
    %48 = math.exp %47 : vector<8x8xf32>
    %cst_22 = arith.constant dense<0.000000e+00> : vector<8xf32>
    %49 = vector.multi_reduction <add>, %48, %cst_22 [1] : vector<8x8xf32> to vector<8xf32>
    %50 = vector.shape_cast %49 : vector<8xf32> to vector<8x1xf32>
    %cst_23 = arith.constant dense<0.000000e+00> : vector<8x8xf32>
    %51 = tpu.matmul %48, %22, %cst_23 {dimension_numbers = #tpu.dot_dimension_numbers<[1], [0], [0], [1], [0, 0, 1, 1], [], []>} : vector<8x8xf32>, vector<8x8xf32>, vector<8x8xf32> -> vector<8x8xf32>
    %52 = tpu.reciprocal %50 : vector<8x1xf32> -> vector<8x1xf32>
    %53 = vector.broadcast %52 : vector<8x1xf32> to vector<8x8xf32>
    %54 = arith.mulf %51, %53 : vector<8x8xf32>
    %cst_24 = arith.constant dense<0.000000e+00> : vector<8x32xf32>
    %55 = tpu.matmul %54, %17, %cst_24 {dimension_numbers = #tpu.dot_dimension_numbers<[1], [0], [0], [1], [0, 0, 1, 1], [], []>} : vector<8x8xf32>, vector<8x32xf32>, vector<8x32xf32> -> vector<8x32xf32>
    %56 = arith.addf %39, %55 : vector<8x32xf32>
    %57 = vector.extract_strided_slice %12 {offsets = [0, 8], sizes = [8, 8], strides = [1, 1]} : vector<16x16xf32> to vector<8x8xf32>
    %58 = vector.extract_strided_slice %4 {offsets = [0, 8], sizes = [8, 8], strides = [1, 1]} : vector<16x16xf32> to vector<8x8xf32>
    %59 = vector.extract_strided_slice %11 {offsets = [0, 16], sizes = [8, 8], strides = [1, 1]} : vector<16x32xf32> to vector<8x8xf32>
    %cst_25 = arith.constant dense<0.000000e+00> : vector<8x8xf32>
    %60 = tpu.matmul %59, %57, %cst_25 {dimension_numbers = #tpu.dot_dimension_numbers<[1], [1], [0], [0], [0, 0, 1, 0], [], []>} : vector<8x8xf32>, vector<8x8xf32>, vector<8x8xf32> -> vector<8x8xf32>
    %cst_26 = arith.constant -1.000000e+30 : f32
    %61 = vector.broadcast %cst_26 : f32 to vector<8x8xf32>
    %62 = arith.select %15, %60, %61 : vector<8x8xi1>, vector<8x8xf32>
    %cst_27 = arith.constant dense<0xFF800000> : vector<8xf32>
    %63 = vector.multi_reduction <maximumf>, %62, %cst_27 [1] : vector<8x8xf32> to vector<8xf32>
    %64 = vector.shape_cast %63 : vector<8xf32> to vector<8x1xf32>
    %65 = vector.broadcast %64 : vector<8x1xf32> to vector<8x8xf32>
    %66 = arith.subf %62, %65 : vector<8x8xf32>
    %67 = math.exp %66 : vector<8x8xf32>
    %cst_28 = arith.constant dense<0.000000e+00> : vector<8xf32>
    %68 = vector.multi_reduction <add>, %67, %cst_28 [1] : vector<8x8xf32> to vector<8xf32>
    %69 = vector.shape_cast %68 : vector<8xf32> to vector<8x1xf32>
    %cst_29 = arith.constant dense<0.000000e+00> : vector<8x8xf32>
    %70 = tpu.matmul %67, %58, %cst_29 {dimension_numbers = #tpu.dot_dimension_numbers<[1], [0], [0], [1], [0, 0, 1, 1], [], []>} : vector<8x8xf32>, vector<8x8xf32>, vector<8x8xf32> -> vector<8x8xf32>
    %71 = tpu.reciprocal %69 : vector<8x1xf32> -> vector<8x1xf32>
    %72 = vector.broadcast %71 : vector<8x1xf32> to vector<8x8xf32>
    %73 = arith.mulf %70, %72 : vector<8x8xf32>
    %cst_30 = arith.constant dense<0.000000e+00> : vector<8x32xf32>
    %74 = tpu.matmul %73, %18, %cst_30 {dimension_numbers = #tpu.dot_dimension_numbers<[1], [0], [0], [1], [0, 0, 1, 1], [], []>} : vector<8x8xf32>, vector<8x32xf32>, vector<8x32xf32> -> vector<8x32xf32>
    %75 = arith.addf %56, %74 : vector<8x32xf32>
    %76 = vector.extract_strided_slice %11 {offsets = [0, 24], sizes = [8, 8], strides = [1, 1]} : vector<16x32xf32> to vector<8x8xf32>
    %cst_31 = arith.constant dense<0.000000e+00> : vector<8x8xf32>
    %77 = tpu.matmul %76, %57, %cst_31 {dimension_numbers = #tpu.dot_dimension_numbers<[1], [1], [0], [0], [0, 0, 1, 0], [], []>} : vector<8x8xf32>, vector<8x8xf32>, vector<8x8xf32> -> vector<8x8xf32>
    %cst_32 = arith.constant -1.000000e+30 : f32
    %78 = vector.broadcast %cst_32 : f32 to vector<8x8xf32>
    %79 = arith.select %15, %77, %78 : vector<8x8xi1>, vector<8x8xf32>
    %cst_33 = arith.constant dense<0xFF800000> : vector<8xf32>
    %80 = vector.multi_reduction <maximumf>, %79, %cst_33 [1] : vector<8x8xf32> to vector<8xf32>
    %81 = vector.shape_cast %80 : vector<8xf32> to vector<8x1xf32>
    %82 = vector.broadcast %81 : vector<8x1xf32> to vector<8x8xf32>
    %83 = arith.subf %79, %82 : vector<8x8xf32>
    %84 = math.exp %83 : vector<8x8xf32>
    %cst_34 = arith.constant dense<0.000000e+00> : vector<8xf32>
    %85 = vector.multi_reduction <add>, %84, %cst_34 [1] : vector<8x8xf32> to vector<8xf32>
    %86 = vector.shape_cast %85 : vector<8xf32> to vector<8x1xf32>
    %cst_35 = arith.constant dense<0.000000e+00> : vector<8x8xf32>
    %87 = tpu.matmul %84, %58, %cst_35 {dimension_numbers = #tpu.dot_dimension_numbers<[1], [0], [0], [1], [0, 0, 1, 1], [], []>} : vector<8x8xf32>, vector<8x8xf32>, vector<8x8xf32> -> vector<8x8xf32>
    %88 = tpu.reciprocal %86 : vector<8x1xf32> -> vector<8x1xf32>
    %89 = vector.broadcast %88 : vector<8x1xf32> to vector<8x8xf32>
    %90 = arith.mulf %87, %89 : vector<8x8xf32>
    %cst_36 = arith.constant dense<0.000000e+00> : vector<8x32xf32>
    %91 = tpu.matmul %90, %19, %cst_36 {dimension_numbers = #tpu.dot_dimension_numbers<[1], [0], [0], [1], [0, 0, 1, 1], [], []>} : vector<8x8xf32>, vector<8x32xf32>, vector<8x32xf32> -> vector<8x32xf32>
    %92 = arith.addf %75, %91 : vector<8x32xf32>
    %c0_37 = arith.constant 0 : index
    %c0_38 = arith.constant 0 : index
    %93 = vector.load %arg6[%c0_37, %c0_38] : memref<16x32xf32, #tpu.memory_space<vmem>>, vector<8x32xf32>
    tpu.vector_store %arg6[%c0_37, %c0_38], %92 {strides = array<i32>} : memref<16x32xf32, #tpu.memory_space<vmem>>, vector<8x32xf32>,
    %cst_39 = arith.constant 0.000000e+00 : f32
    %94 = vector.broadcast %cst_39 : f32 to vector<8x32xf32>
    %95 = vector.extract_strided_slice %12 {offsets = [8, 0], sizes = [8, 8], strides = [1, 1]} : vector<16x16xf32> to vector<8x8xf32>
    %96 = vector.extract_strided_slice %4 {offsets = [8, 0], sizes = [8, 8], strides = [1, 1]} : vector<16x16xf32> to vector<8x8xf32>
    %97 = vector.extract_strided_slice %11 {offsets = [8, 0], sizes = [8, 8], strides = [1, 1]} : vector<16x32xf32> to vector<8x8xf32>
    %cst_40 = arith.constant dense<0.000000e+00> : vector<8x8xf32>
    %98 = tpu.matmul %97, %95, %cst_40 {dimension_numbers = #tpu.dot_dimension_numbers<[1], [1], [0], [0], [0, 0, 1, 0], [], []>} : vector<8x8xf32>, vector<8x8xf32>, vector<8x8xf32> -> vector<8x8xf32>
    %cst_41 = arith.constant -1.000000e+30 : f32
    %99 = vector.broadcast %cst_41 : f32 to vector<8x8xf32>
    %100 = arith.select %15, %98, %99 : vector<8x8xi1>, vector<8x8xf32>
    %cst_42 = arith.constant dense<0xFF800000> : vector<8xf32>
    %101 = vector.multi_reduction <maximumf>, %100, %cst_42 [1] : vector<8x8xf32> to vector<8xf32>
    %102 = vector.shape_cast %101 : vector<8xf32> to vector<8x1xf32>
    %103 = vector.broadcast %102 : vector<8x1xf32> to vector<8x8xf32>
    %104 = arith.subf %100, %103 : vector<8x8xf32>
    %105 = math.exp %104 : vector<8x8xf32>
    %cst_43 = arith.constant dense<0.000000e+00> : vector<8xf32>
    %106 = vector.multi_reduction <add>, %105, %cst_43 [1] : vector<8x8xf32> to vector<8xf32>
    %107 = vector.shape_cast %106 : vector<8xf32> to vector<8x1xf32>
    %cst_44 = arith.constant dense<0.000000e+00> : vector<8x8xf32>
    %108 = tpu.matmul %105, %96, %cst_44 {dimension_numbers = #tpu.dot_dimension_numbers<[1], [0], [0], [1], [0, 0, 1, 1], [], []>} : vector<8x8xf32>, vector<8x8xf32>, vector<8x8xf32> -> vector<8x8xf32>
    %109 = tpu.reciprocal %107 : vector<8x1xf32> -> vector<8x1xf32>
    %110 = vector.broadcast %109 : vector<8x1xf32> to vector<8x8xf32>
    %111 = arith.mulf %108, %110 : vector<8x8xf32>
    %cst_45 = arith.constant dense<0.000000e+00> : vector<8x32xf32>
    %112 = tpu.matmul %111, %16, %cst_45 {dimension_numbers = #tpu.dot_dimension_numbers<[1], [0], [0], [1], [0, 0, 1, 1], [], []>} : vector<8x8xf32>, vector<8x32xf32>, vector<8x32xf32> -> vector<8x32xf32>
    %113 = arith.addf %94, %112 : vector<8x32xf32>
    %114 = vector.extract_strided_slice %11 {offsets = [8, 8], sizes = [8, 8], strides = [1, 1]} : vector<16x32xf32> to vector<8x8xf32>
    %cst_46 = arith.constant dense<0.000000e+00> : vector<8x8xf32>
    %115 = tpu.matmul %114, %95, %cst_46 {dimension_numbers = #tpu.dot_dimension_numbers<[1], [1], [0], [0], [0, 0, 1, 0], [], []>} : vector<8x8xf32>, vector<8x8xf32>, vector<8x8xf32> -> vector<8x8xf32>
    %cst_47 = arith.constant -1.000000e+30 : f32
    %116 = vector.broadcast %cst_47 : f32 to vector<8x8xf32>
    %117 = arith.select %15, %115, %116 : vector<8x8xi1>, vector<8x8xf32>
    %cst_48 = arith.constant dense<0xFF800000> : vector<8xf32>
    %118 = vector.multi_reduction <maximumf>, %117, %cst_48 [1] : vector<8x8xf32> to vector<8xf32>
    %119 = vector.shape_cast %118 : vector<8xf32> to vector<8x1xf32>
    %120 = vector.broadcast %119 : vector<8x1xf32> to vector<8x8xf32>
    %121 = arith.subf %117, %120 : vector<8x8xf32>
    %122 = math.exp %121 : vector<8x8xf32>
    %cst_49 = arith.constant dense<0.000000e+00> : vector<8xf32>
    %123 = vector.multi_reduction <add>, %122, %cst_49 [1] : vector<8x8xf32> to vector<8xf32>
    %124 = vector.shape_cast %123 : vector<8xf32> to vector<8x1xf32>
    %cst_50 = arith.constant dense<0.000000e+00> : vector<8x8xf32>
    %125 = tpu.matmul %122, %96, %cst_50 {dimension_numbers = #tpu.dot_dimension_numbers<[1], [0], [0], [1], [0, 0, 1, 1], [], []>} : vector<8x8xf32>, vector<8x8xf32>, vector<8x8xf32> -> vector<8x8xf32>
    %126 = tpu.reciprocal %124 : vector<8x1xf32> -> vector<8x1xf32>
    %127 = vector.broadcast %126 : vector<8x1xf32> to vector<8x8xf32>
    %128 = arith.mulf %125, %127 : vector<8x8xf32>
    %cst_51 = arith.constant dense<0.000000e+00> : vector<8x32xf32>
    %129 = tpu.matmul %128, %17, %cst_51 {dimension_numbers = #tpu.dot_dimension_numbers<[1], [0], [0], [1], [0, 0, 1, 1], [], []>} : vector<8x8xf32>, vector<8x32xf32>, vector<8x32xf32> -> vector<8x32xf32>
    %130 = arith.addf %113, %129 : vector<8x32xf32>
    %131 = vector.extract_strided_slice %12 {offsets = [8, 8], sizes = [8, 8], strides = [1, 1]} : vector<16x16xf32> to vector<8x8xf32>
    %132 = vector.extract_strided_slice %4 {offsets = [8, 8], sizes = [8, 8], strides = [1, 1]} : vector<16x16xf32> to vector<8x8xf32>
    %133 = vector.extract_strided_slice %11 {offsets = [8, 16], sizes = [8, 8], strides = [1, 1]} : vector<16x32xf32> to vector<8x8xf32>
    %cst_52 = arith.constant dense<0.000000e+00> : vector<8x8xf32>
    %134 = tpu.matmul %133, %131, %cst_52 {dimension_numbers = #tpu.dot_dimension_numbers<[1], [1], [0], [0], [0, 0, 1, 0], [], []>} : vector<8x8xf32>, vector<8x8xf32>, vector<8x8xf32> -> vector<8x8xf32>
    %cst_53 = arith.constant -1.000000e+30 : f32
    %135 = vector.broadcast %cst_53 : f32 to vector<8x8xf32>
    %136 = arith.select %15, %134, %135 : vector<8x8xi1>, vector<8x8xf32>
    %cst_54 = arith.constant dense<0xFF800000> : vector<8xf32>
    %137 = vector.multi_reduction <maximumf>, %136, %cst_54 [1] : vector<8x8xf32> to vector<8xf32>
    %138 = vector.shape_cast %137 : vector<8xf32> to vector<8x1xf32>
    %139 = vector.broadcast %138 : vector<8x1xf32> to vector<8x8xf32>
    %140 = arith.subf %136, %139 : vector<8x8xf32>
    %141 = math.exp %140 : vector<8x8xf32>
    %cst_55 = arith.constant dense<0.000000e+00> : vector<8xf32>
    %142 = vector.multi_reduction <add>, %141, %cst_55 [1] : vector<8x8xf32> to vector<8xf32>
    %143 = vector.shape_cast %142 : vector<8xf32> to vector<8x1xf32>
    %cst_56 = arith.constant dense<0.000000e+00> : vector<8x8xf32>
    %144 = tpu.matmul %141, %132, %cst_56 {dimension_numbers = #tpu.dot_dimension_numbers<[1], [0], [0], [1], [0, 0, 1, 1], [], []>} : vector<8x8xf32>, vector<8x8xf32>, vector<8x8xf32> -> vector<8x8xf32>
    %145 = tpu.reciprocal %143 : vector<8x1xf32> -> vector<8x1xf32>
    %146 = vector.broadcast %145 : vector<8x1xf32> to vector<8x8xf32>
    %147 = arith.mulf %144, %146 : vector<8x8xf32>
    %cst_57 = arith.constant dense<0.000000e+00> : vector<8x32xf32>
    %148 = tpu.matmul %147, %18, %cst_57 {dimension_numbers = #tpu.dot_dimension_numbers<[1], [0], [0], [1], [0, 0, 1, 1], [], []>} : vector<8x8xf32>, vector<8x32xf32>, vector<8x32xf32> -> vector<8x32xf32>
    %149 = arith.addf %130, %148 : vector<8x32xf32>
    %150 = vector.extract_strided_slice %11 {offsets = [8, 24], sizes = [8, 8], strides = [1, 1]} : vector<16x32xf32> to vector<8x8xf32>
    %cst_58 = arith.constant dense<0.000000e+00> : vector<8x8xf32>
    %151 = tpu.matmul %150, %131, %cst_58 {dimension_numbers = #tpu.dot_dimension_numbers<[1], [1], [0], [0], [0, 0, 1, 0], [], []>} : vector<8x8xf32>, vector<8x8xf32>, vector<8x8xf32> -> vector<8x8xf32>
    %cst_59 = arith.constant -1.000000e+30 : f32
    %152 = vector.broadcast %cst_59 : f32 to vector<8x8xf32>
    %153 = arith.select %15, %151, %152 : vector<8x8xi1>, vector<8x8xf32>
    %cst_60 = arith.constant dense<0xFF800000> : vector<8xf32>
    %154 = vector.multi_reduction <maximumf>, %153, %cst_60 [1] : vector<8x8xf32> to vector<8xf32>
    %155 = vector.shape_cast %154 : vector<8xf32> to vector<8x1xf32>
    %156 = vector.broadcast %155 : vector<8x1xf32> to vector<8x8xf32>
    %157 = arith.subf %153, %156 : vector<8x8xf32>
    %158 = math.exp %157 : vector<8x8xf32>
    %cst_61 = arith.constant dense<0.000000e+00> : vector<8xf32>
    %159 = vector.multi_reduction <add>, %158, %cst_61 [1] : vector<8x8xf32> to vector<8xf32>
    %160 = vector.shape_cast %159 : vector<8xf32> to vector<8x1xf32>
    %cst_62 = arith.constant dense<0.000000e+00> : vector<8x8xf32>
    %161 = tpu.matmul %158, %132, %cst_62 {dimension_numbers = #tpu.dot_dimension_numbers<[1], [0], [0], [1], [0, 0, 1, 1], [], []>} : vector<8x8xf32>, vector<8x8xf32>, vector<8x8xf32> -> vector<8x8xf32>
    %162 = tpu.reciprocal %160 : vector<8x1xf32> -> vector<8x1xf32>
    %163 = vector.broadcast %162 : vector<8x1xf32> to vector<8x8xf32>
    %164 = arith.mulf %161, %163 : vector<8x8xf32>
    %cst_63 = arith.constant dense<0.000000e+00> : vector<8x32xf32>
    %165 = tpu.matmul %164, %19, %cst_63 {dimension_numbers = #tpu.dot_dimension_numbers<[1], [0], [0], [1], [0, 0, 1, 1], [], []>} : vector<8x8xf32>, vector<8x32xf32>, vector<8x32xf32> -> vector<8x32xf32>
    %166 = arith.addf %149, %165 : vector<8x32xf32>
    %c8_64 = arith.constant 8 : index
    %c0_65 = arith.constant 0 : index
    %167 = vector.load %arg6[%c8_64, %c0_65] : memref<16x32xf32, #tpu.memory_space<vmem>>, vector<8x32xf32>
    tpu.vector_store %arg6[%c8_64, %c0_65], %166 {strides = array<i32>} : memref<16x32xf32, #tpu.memory_space<vmem>>, vector<8x32xf32>,
    return
  }
  func.func @transform_0(%arg0: i32) -> (i32, i32) {
    %c0_i32 = arith.constant 0 : i32
    %c0_i32_0 = arith.constant 0 : i32
    %c0_i32_1 = arith.constant 0 : i32
    return %c0_i32, %c0_i32_0 : i32, i32
  }
  func.func @transform_1(%arg0: i32) -> (i32, i32) {
    %c0_i32 = arith.constant 0 : i32
    %c0_i32_0 = arith.constant 0 : i32
    %c0_i32_1 = arith.constant 0 : i32
    return %c0_i32, %c0_i32_0 : i32, i32
  }
  func.func @transform_2(%arg0: i32) -> (i32, i32) {
    %c0_i32 = arith.constant 0 : i32
    %c0_i32_0 = arith.constant 0 : i32
    %c0_i32_1 = arith.constant 0 : i32
    return %c0_i32, %c0_i32_0 : i32, i32
  }
  func.func @transform_3(%arg0: i32) -> (i32, i32) {
    %c0_i32 = arith.constant 0 : i32
    %c0_i32_0 = arith.constant 0 : i32
    %c0_i32_1 = arith.constant 0 : i32
    return %c0_i32, %c0_i32_0 : i32, i32
  }
  func.func @transform_4(%arg0: i32) -> (i32, i32) {
    %c0_i32 = arith.constant 0 : i32
    %c0_i32_0 = arith.constant 0 : i32
    %c0_i32_1 = arith.constant 0 : i32
    return %c0_i32, %c0_i32_0 : i32, i32
  }
  func.func @transform_5(%arg0: i32) -> (i32, i32) {
    %c0_i32 = arith.constant 0 : i32
    %c0_i32_0 = arith.constant 0 : i32
    %c0_i32_1 = arith.constant 0 : i32
    return %c0_i32, %c0_i32_0 : i32, i32
  }
}

</mosaic_0001>

<bundles_post_ra>
// kernel: _attention_pallas.1
= control target key start
LH: loop header
LB: loop body
LE: loop exit
PB: predicated region body
PF: predicated region fallthrough
CT: control target
= control target key end

     0   :  { %10 = vsyncpa [#allocation3], 0  ;;  %s2844_s0 = inlined_call_operand.hbm [shape: f32[16,32], index: 0, kind: input, shape index: {}]   ;;  %s2845_s1 = inlined_call_operand.hbm [shape: f32[32,112], index: 1, kind: input, shape index: {}]   ;;  %s2846_s2 = inlined_call_operand.hbm [shape: f32[32,32], index: 2, kind: input, shape index: {}]   ;;  %s2847_s3 = inlined_call_operand.hbm [shape: f32[16,48], index: 3, kind: input, shape index: {}]   ;;  %s2848_s4 = inlined_call_operand.vmem [shape: f32[16,48], index: 4, kind: input, shape index: {}]   ;;  %s2849_s5 = inlined_call_operand.hbm [shape: f32[16,32], index: 5, kind: output, shape index: {}]  }
   0x1   :  { %11 = vsyncpa [#allocation6], 0 }
   0x2   :  { %12 = vsyncpa [#allocation9], 0 }
   0x3   :  { %13 = vsyncpa [#allocation4], 0  ;;  %s2515_s18 = smov [#allocation5]   ;;  %s2516_s20 = smov [#allocation2]  }
   0x4   :  { %s31_s19 = sshll.u32 %s2515_s18, 4  ;;  %s19_s21 = sshll.u32 %s2516_s20, 4  ;;  %s32_s19 = int_to_ptr.vmem [resolvable:$true] %s31_s19  ;;  %s2562_s21 = int_to_ptr.vmem [resolvable:$true] %s19_s21 }
   0x5   :  { %s2397_s24 = scalar_lea.hbm %s2845_s1, 512 }
   0x6   :  { %p2398_p0 = scmp.ne.s32.totalorder %s2845_s1, %s2397_s24  ;;  %p2401_p1 = scmp.lt.u32.totalorder %s2397_s24, %s2845_s1 }
   0x8   :  { %p2403_p2 = pnand %p2401_p1, %p2398_p0 }
   0xa   :  { %2406 = shalt.err (!%p2403_p2)
}
   0xb   :  { %s2407_s29 = scalar_lea.vmem %s32_s19, 512  ;;  %p2412_p4 = scmp.lt.s32.totalorder %s32_s19, %s32_s19 }
   0xc   :  { %p2408_p3 = scmp.ne.s32.totalorder %s32_s19, %s2407_s29  ;;  %p2413_p5 = scmp.lt.s32.totalorder %s2407_s29, %s2407_s29 }
   0xe   :  { %p2414_p6 = por %p2413_p5, %p2412_p4 }
  0x10   :  { %p2415_p7 = pnand %p2414_p6, %p2408_p3 }
  0x12   :  { %2418 = shalt.err (!%p2415_p7)
}
  0x13   :  { %s2517_s30 = smov 128   ;;  %s2518_s6 = smov 8  }
  0x14   :  { %37 = dma.hbm_to_vmem [thread:$0]  %s2845_s1, 512, %s32_s19, [#allocation6], %s2517_s30, %s2517_s30, %s2518_s6  }
  0x15   :  { %s2419_s11 = scalar_lea.hbm %s2844_s0, 256 }
  0x16   :  { %p2420_p8 = scmp.ne.s32.totalorder %s2844_s0, %s2419_s11  ;;  %p2423_p9 = scmp.lt.u32.totalorder %s2419_s11, %s2844_s0 }
  0x18   :  { %p2425_p10 = pnand %p2423_p9, %p2420_p8 }
  0x1a   :  { %2428 = shalt.err (!%p2425_p10)
}
  0x1b   :  { %s2429_s16 = scalar_lea.vmem %s2562_s21, 256  ;;  %p2434_p12 = scmp.lt.s32.totalorder %s2562_s21, %s2562_s21 }
  0x1c   :  { %p2430_p11 = scmp.ne.s32.totalorder %s2562_s21, %s2429_s16  ;;  %p2435_p13 = scmp.lt.s32.totalorder %s2429_s16, %s2429_s16 }
  0x1e   :  { %p2436_p0 = por %p2435_p13, %p2434_p12 }
  0x20   :  { %p2437_p1 = pnand %p2436_p0, %p2430_p11 }
  0x22   :  { %2440 = shalt.err (!%p2437_p1)
}
  0x23   :  { %25 = dma.hbm_to_vmem [thread:$0]  %s2844_s0, 256, %s2562_s21, [#allocation3], %s2517_s30, %s2517_s30, %s2518_s6  }
  0x24   :  { %s2519_s18 = smov [#allocation7]   ;;  %s2520_s20 = smov [#allocation8]  }
  0x25   :  { %s43_s19 = sshll.u32 %s2519_s18, 4  ;;  %s55_s22 = sshll.u32 %s2520_s20, 4  ;;  %s44_s19 = int_to_ptr.vmem [resolvable:$true] %s43_s19  ;;  %s2599_s22 = int_to_ptr.vmem [resolvable:$true] %s55_s22 }
  0x26   :  { %s2441_s25 = scalar_lea.hbm %s2846_s2, 512 }
  0x27   :  { %p2442_p2 = scmp.ne.s32.totalorder %s2846_s2, %s2441_s25  ;;  %p2445_p3 = scmp.lt.u32.totalorder %s2441_s25, %s2846_s2 }
  0x29   :  { %p2447_p4 = pnand %p2445_p3, %p2442_p2 }
  0x2b   :  { %2450 = shalt.err (!%p2447_p4)
}
  0x2c   :  { %s2451_s0 = scalar_lea.vmem %s44_s19, 512  ;;  %p2456_p6 = scmp.lt.s32.totalorder %s44_s19, %s44_s19 }
  0x2d   :  { %p2452_p5 = scmp.ne.s32.totalorder %s44_s19, %s2451_s0  ;;  %p2457_p7 = scmp.lt.s32.totalorder %s2451_s0, %s2451_s0 }
  0x2f   :  { %p2458_p8 = por %p2457_p7, %p2456_p6 }
  0x31   :  { %p2459_p9 = pnand %p2458_p8, %p2452_p5 }
  0x33   :  { %2462 = shalt.err (!%p2459_p9)
}
  0x34   :  { %49 = dma.hbm_to_vmem [thread:$0]  %s2846_s2, 512, %s44_s19, [#allocation6], %s2517_s30, %s2517_s30, %s2518_s6  }
  0x35   :  { %s2463_s10 = scalar_lea.hbm %s2847_s3, 256 }
  0x36   :  { %p2464_p10 = scmp.ne.s32.totalorder %s2847_s3, %s2463_s10  ;;  %p2467_p11 = scmp.lt.u32.totalorder %s2463_s10, %s2847_s3 }
  0x38   :  { %p2469_p12 = pnand %p2467_p11, %p2464_p10 }
  0x3a   :  { %2472 = shalt.err (!%p2469_p12)
}
  0x3b   :  { %s2473_s15 = scalar_lea.vmem %s2599_s22, 256  ;;  %p2478_p0 = scmp.lt.s32.totalorder %s2599_s22, %s2599_s22 }
  0x3c   :  { %p2474_p13 = scmp.ne.s32.totalorder %s2599_s22, %s2473_s15  ;;  %p2479_p1 = scmp.lt.s32.totalorder %s2473_s15, %s2473_s15 }
  0x3e   :  { %p2480_p2 = por %p2479_p1, %p2478_p0 }
  0x40   :  { %p2481_p3 = pnand %p2480_p2, %p2474_p13 }
  0x42   :  { %2484 = shalt.err (!%p2481_p3)
}
  0x43   :  { %61 = dma.hbm_to_vmem [thread:$0]  %s2847_s3, 256, %s2599_s22, [#allocation9], %s2517_s30, %s2517_s30, %s2518_s6  }
  0x44   :  { %2507 = dma.done.wait [#allocation3], 256  }
  0x45   :  { %2508 = vsyncadd [#allocation3], 4294967040 }
  0x46   :  { %2509 = dma.done.wait [#allocation6], 1024  }
  0x47   :  { %2510 = vsyncadd [#allocation6], 4294966272 }
  0x48   :  { %2511 = dma.done.wait [#allocation9], 256  }
  0x49   :  { %2512 = vsyncadd [#allocation9], 4294967040  ;;  %vm82_vm0 = vcmask 261120   ;;  %v78_v0 = vld [vmem:[#allocation5] sm:$0xff]  ;;  %v79_v1 = vld [vmem:[#allocation5 + $0x8] sm:$0xff]  ;;  %s2521_s3 = smov 64   ;;  %v190_v20 = vlaneseq }
  0x4a   :  { %v80_v2 = vld [vmem:[#allocation5 + $0x10] sm:$0xff]  ;;  %v2328_v3 = vpack.c.bf16 %v79_v1, %v78_v0  ;;  %v81_v4 = vld [vmem:[#allocation5 + $0x18] sm:$0xff]  ;;  %v2522_v9 = vmov 0.0   ;;  %s2523_s18 = smov 80   ;;  %vm2524_vm1 = vmmov 0   ;;  %v164_v14 = vld [vmem:[#allocation8] sm:$0xff] }
  0x4b   :  { %v76_v5 = vld [vmem:[#allocation2] sm:$0xff]  ;;  %v2332_v6 = vpack.c.bf16 %v81_v4, %v80_v2  ;;  %v77_v8 = vld [vmem:[#allocation2 + $0x8] sm:$0xff]  ;;  %2208 = vmatprep.subr.mxu1 %v2522_v9  ;;  %2210 = vmatprep.mubr.msk.f32.mxu1 %vm2524_vm1, %v2522_v9  ;;  %s2525_s19 = smov 120   ;;  %s2526_s20 = smov 96   ;;  %vm202_vm2 = vcmask 64512   ;;  %v191_v21 = vshrl.u32 %v190_v20, 7 }
  0x4c   :  { %2205 = vmatprep.mubr.msk.f32.mxu0 %vm82_vm0, %v76_v5  ;;  %v168_v7 = vld [vmem:[%s2848_s4] sm:$0xff]  ;;  %2329 = vmatprep.subr.bf16.mxu0 %v2328_v3  ;;  %v193_v22 = vand.u32 127, %v190_v20  ;;  %s2527_s22 = smov 88   ;;  %s2528_s23 = smov 112   ;;  %v2695_v47 = vld [vmem:[#allocation7 + $0x8] sm:$0xff]  ;;  %v2706_v59 = vld [vmem:[#allocation7] sm:$0xff] }
  0x4d   :  { %172 = vrot.lane.b32.xlu0 %v168_v7, %s2521_s3  ;;  %2331 = vmatpush3.bf16.msra.mxu0 %v2328_v3  ;;  %s2529_s24 = smov 72   ;;  %s2530_s25 = smov 104   ;;  %v2723_v4 = vld [vmem:[#allocation7 + $0x10] sm:$0xff] }
  0x4e   :  { %2333 = vmatprep.subr.bf16.mxu0 %v2332_v6  ;;  %vm2660_vm3 = vcmp.le.s32.totalorder %v193_v22, %v191_v21 }
  0x51   :  { %2335 = vmatpush3.bf16.msra.mxu0 %v2332_v6 }
  0x52   :  { %2228 = vmatprep.subr.mxu0 %v2522_v9 }
  0x54   :  { %2206 = vmatmul.mubr.msk.f32.vlgmr.msra.gmra.mrb[0].mxu0 %vm82_vm0, %v77_v8 }
  0x55   :  { %2230 = vmatprep.mubr.msk.f32.mxu0 %vm2524_vm1, %v2522_v9  ;;  %2229 = vmatpush3.msra.mxu0 %v2695_v47 }
  0x56   :  { %2233 = vmatprep.subr.mxu0 %v2522_v9 }
  0xbf   :  { %v173_v10 = vpop.permute.xlu0 %172 }
 0x127   :  { %v2644_v11 = vpop.f32.mrb[0].mxu0 }
 0x128   :  { %v155_v12 = vpop.f32.mrb[1].mxu0 }
 0x129   :  { %v178_v13 = vmul.f32 %v173_v10, %v155_v12  ;;  %v166_v15 = vmul.f32 %v164_v14, %v155_v12 }
 0x12b   :  { %182 = vrot.lane.b32.xlu0 %v178_v13, %s2521_s3 }
 0x12f   :  { %288 = vrot.lane.b32.xlu0 %v155_v12, %s2523_s18 }
 0x19d   :  { %v183_v16 = vpop.permute.xlu0 %182 }
 0x19e   :  { %v188_v17 = vadd.f32 %v183_v16, %v166_v15  ;;  %v169_v16 = vld [vmem:[%s2848_s4 + $0x8] sm:$0xff]  ;;  %s2531_s4 = smov [#allocation10]  }
 0x19f   :  { %s2095_s28 = sshll.u32 %s2531_s4, 4  ;;  %s2096_s28 = int_to_ptr.vmem [resolvable:$true] %s2095_s28 }
 0x1a0   :  { %366 = vrot.lane.b32.xlu0 %v188_v17, %s2525_s19  ;;  %200 = vrot.lane.b32.xlu1 %v188_v17, %s2526_s20  ;;  %s2485_s29 = scalar_lea.vmem %s2096_s28, 256  ;;  %p2490_p5 = scmp.lt.s32.totalorder %s2096_s28, %s2096_s28 }
 0x1a1   :  { %v289_v19 = vpop.permute.xlu0 %288  ;;  %p2486_p4 = scmp.ne.s32.totalorder %s2096_s28, %s2485_s29  ;;  %p2491_p6 = scmp.lt.s32.totalorder %s2485_s29, %s2485_s29 }
 0x1a3   :  { %p2492_p7 = por %p2491_p6, %p2490_p5 }
 0x1a5   :  { %p2493_p8 = pnand %p2492_p7, %p2486_p4 }
 0x212   :  { %v201_v18 = vpop.permute.xlu1 %200  ;;  %v367_v32 = vpop.permute.xlu0 %366 }
 0x213   :  { %2209 = vmatpush3.xpose.msk.msra.mxu1 %vm202_vm2, %v201_v18 }
 0x214   :  { %2213 = vmatprep.subr.mxu1 %v2522_v9 }
 0x216   :  { %2211 = vmatmul.mubr.msk.f32.vlgmr.msra.gmra.mrb[0].mxu1 %vm202_vm2, %v188_v17 }
 0x217   :  { %2214 = vmatpush3.msra.mxu1 %v289_v19  ;;  %2215 = vmatprep.mubr.msk.f32.mxu1 %vm2524_vm1, %v2522_v9 }
 0x218   :  { %2218 = vmatprep.subr.mxu1 %v2522_v9 }
 0x2e9   :  { %v273_v24 = vpop.f32.mrb[0].mxu1 }
 0x2ea   :  { %v277_v25 = vsel %vm2660_vm3, %v273_v24, -1e+30  ;;  %v2212_v26 = vpop.f32.mrb[1].mxu1 }
 0x2eb   :  { %v278_v27 = vsel %vm202_vm2, %v277_v25, -inf  ;;  %v165_v26 = vld [vmem:[#allocation8 + $0x8] sm:$0xff] }
 0x2ec   :  { %279 = vmax.xlane.f32.xlu1 %v278_v27  ;;  %v167_v27 = vmul.f32 %v2644_v11, %v165_v26 }
 0x2fd   :  { %673 = vrot.lane.b32.xlu1 %v188_v17, %s2527_s22 }
 0x379   :  { %v280_v28 = vpop.xlane.xlu1 %279 }
 0x37a   :  { %v281_v29 = vsub.f32 %v277_v25, %v280_v28  ;;  %v2746_v25 = vld [vmem:[#allocation7 + $0x18] sm:$0xff] }
 0x37c   :  { %v282_v30 = vmul.f32 1.442695, %v281_v29 }
 0x37d   :  { %v674_v44 = vpop.permute.xlu1 %673 }
 0x37e   :  { %2365 = vpow2.f32 %v282_v30 }
 0x388   :  { %v2366_v31 = vpop.eup %2365 }
 0x389   :  { %2216 = vmatmul.mubr.msk.f32.vlgmr.msra.gmra.mrb[2].mxu1 %vm202_vm2, %v2366_v31  ;;  %v284_v58 = vsel %vm202_vm2, %v2366_v31, 0.0 }
 0x38a   :  { %2219 = vmatpush3.xpose.msk.msra.mxu1 %vm202_vm2, %v201_v18  ;;  %2220 = vmatprep.mubr.msk.f32.mxu1 %vm2524_vm1, %v2522_v9 }
 0x38b   :  { %2223 = vmatprep.subr.mxu1 %v2522_v9 }
 0x38d   :  { %2221 = vmatmul.mubr.msk.f32.vlgmr.msra.gmra.mrb[4].mxu1 %vm202_vm2, %v367_v32 }
 0x38e   :  { %2224 = vmatpush3.msra.mxu1 %v289_v19  ;;  %2225 = vmatprep.mubr.msk.f32.mxu1 %vm2524_vm1, %v2522_v9 }
 0x38f   :  { %2238 = vmatprep.subr.mxu1 %v2522_v9 }
 0x45c   :  { %v2677_v33 = vpop.f32.mrb[2].mxu1 }
 0x45d   :  { %v2217_v34 = vpop.f32.mrb[3].mxu1 }
 0x460   :  { %v436_v35 = vpop.f32.mrb[4].mxu1 }
 0x461   :  { %v440_v36 = vsel %vm2660_vm3, %v436_v35, -1e+30  ;;  %v2222_v37 = vpop.f32.mrb[5].mxu1 }
 0x462   :  { %v441_v38 = vsel %vm202_vm2, %v440_v36, -inf }
 0x463   :  { %442 = vmax.xlane.f32.xlu0 %v441_v38 }
 0x479   :  { %671 = vrot.lane.b32.xlu0 %v188_v17, %s2528_s23 }
 0x47d   :  { %759 = vrot.lane.b32.xlu0 %v155_v12, %s2529_s24 }
 0x481   :  { %911 = vrot.lane.b32.xlu0 %v188_v17, %s2530_s25 }
 0x4f0   :  { %v443_v39 = vpop.xlane.xlu0 %442 }
 0x4f1   :  { %v444_v40 = vsub.f32 %v440_v36, %v443_v39 }
 0x4f3   :  { %v445_v41 = vmul.f32 1.442695, %v444_v40 }
 0x4f4   :  { %v672_v42 = vpop.permute.xlu0 %671 }
 0x4f5   :  { %2367 = vpow2.f32 %v445_v41 }
 0x4f8   :  { %v760_v46 = vpop.permute.xlu0 %759 }
 0x4fc   :  { %v912_v48 = vpop.permute.xlu0 %911 }
 0x4ff   :  { %v2368_v43 = vpop.eup %2367 }
 0x500   :  { %2226 = vmatmul.mubr.msk.f32.vlgmr.msra.gmra.mrb[6].mxu1 %vm202_vm2, %v2368_v43  ;;  %v447_v45 = vsel %vm202_vm2, %v2368_v43, 0.0 }
 0x501   :  { %2239 = vmatpush3.xpose.msk.msra.mxu1 %vm202_vm2, %v674_v44  ;;  %448 = vadd.xlane.f32.xlu0 %v447_v45 }
 0x502   :  { %2240 = vmatprep.mubr.msk.f32.mxu1 %vm2524_vm1, %v2522_v9  ;;  %2243 = vmatprep.subr.mxu1 %v2522_v9 }
 0x504   :  { %2241 = vmatmul.mubr.msk.f32.vlgmr.msra.gmra.mrb[8].mxu1 %vm202_vm2, %v672_v42 }
 0x505   :  { %2244 = vmatpush3.msra.mxu1 %v760_v46  ;;  %2245 = vmatprep.mubr.msk.f32.mxu1 %vm2524_vm1, %v2522_v9 }
 0x506   :  { %2253 = vmatprep.subr.mxu1 %v2522_v9 }
 0x58e   :  { %v449_v49 = vpop.xlane.xlu0 %448 }
 0x58f   :  { %2369 = vrcp.f32 %v449_v49 }
 0x599   :  { %v2370_v50 = vpop.eup %2369 }
 0x5d3   :  { %v519_v51 = vpop.f32.mrb[6].mxu1 }
 0x5d4   :  { %v524_v52 = vmul.f32 %v2370_v50, %v519_v51  ;;  %v2227_v53 = vpop.f32.mrb[7].mxu1 }
 0x5d6   :  { %2231 = vmatmul.mubr.msk.f32.vlgmr.msra.gmra.mrb[2].mxu0 %vm202_vm2, %v524_v52 }
 0x5d7   :  { %v745_v54 = vpop.f32.mrb[8].mxu1  ;;  %2235 = vmatprep.mubr.msk.f32.mxu0 %vm2524_vm1, %v2522_v9  ;;  %2234 = vmatpush3.msra.mxu0 %v2706_v59 }
 0x5d8   :  { %v749_v55 = vsel %vm2660_vm3, %v745_v54, -1e+30  ;;  %v2242_v56 = vpop.f32.mrb[9].mxu1  ;;  %2248 = vmatprep.subr.mxu0 %v2522_v9 }
 0x5d9   :  { %v750_v57 = vsel %vm202_vm2, %v749_v55, -inf }
 0x5da   :  { %751 = vmax.xlane.f32.xlu1 %v750_v57 }
 0x5de   :  { %285 = vadd.xlane.f32.xlu1 %v284_v58 }
 0x667   :  { %v752_v60 = vpop.xlane.xlu1 %751 }
 0x668   :  { %v753_v61 = vsub.f32 %v749_v55, %v752_v60 }
 0x66a   :  { %v754_v62 = vmul.f32 1.442695, %v753_v61 }
 0x66b   :  { %v286_v63 = vpop.xlane.xlu1 %285 }
 0x66c   :  { %2371 = vpow2.f32 %v754_v62 }
 0x66d   :  { %2373 = vrcp.f32 %v286_v63 }
 0x676   :  { %v2372_v0 = vpop.eup %2371 }
 0x677   :  { %v2374_v1 = vpop.eup %2373  ;;  %2246 = vmatmul.mubr.msk.f32.vlgmr.msra.gmra.mrb[10].mxu1 %vm202_vm2, %v2372_v0  ;;  %v756_v2 = vsel %vm202_vm2, %v2372_v0, 0.0 }
 0x678   :  { %v365_v3 = vmul.f32 %v2374_v1, %v2677_v33  ;;  %2254 = vmatpush3.xpose.msk.msra.mxu1 %vm202_vm2, %v674_v44  ;;  %757 = vadd.xlane.f32.xlu1 %v756_v2 }
 0x679   :  { %2255 = vmatprep.mubr.msk.f32.mxu1 %vm2524_vm1, %v2522_v9  ;;  %2268 = vmatprep.subr.mxu1 %v2522_v9 }
 0x67a   :  { %2236 = vmatmul.mubr.msk.f32.vlgmr.msra.gmra.mrb[2].mxu0 %vm202_vm2, %v365_v3 }
 0x67b   :  { %2256 = vmatmul.mubr.msk.f32.vlgmr.msra.gmra.mrb[12].mxu1 %vm202_vm2, %v912_v48  ;;  %2250 = vmatprep.mubr.msk.f32.mxu0 %vm2524_vm1, %v2522_v9 }
 0x67c   :  { %2270 = vmatprep.mubr.msk.f32.mxu1 %vm2524_vm1, %v2522_v9  ;;  %2249 = vmatpush3.msra.mxu0 %v2723_v4 }
 0x67d   :  { %2258 = vmatprep.subr.mxu0 %v2522_v9 }
 0x705   :  { %v758_v5 = vpop.xlane.xlu1 %757 }
 0x706   :  { %2375 = vrcp.f32 %v758_v5 }
 0x710   :  { %v2376_v6 = vpop.eup %2375 }
 0x74a   :  { %v831_v7 = vpop.f32.mrb[10].mxu1 }
 0x74b   :  { %v836_v8 = vmul.f32 %v2376_v6, %v831_v7  ;;  %v2247_v10 = vpop.f32.mrb[11].mxu1 }
 0x74d   :  { %2251 = vmatmul.mubr.msk.f32.vlgmr.msra.gmra.mrb[2].mxu0 %vm202_vm2, %v836_v8 }
 0x74e   :  { %2259 = vmatpush3.msra.mxu0 %v760_v46  ;;  %v981_v12 = vpop.f32.mrb[12].mxu1  ;;  %2260 = vmatprep.mubr.msk.f32.mxu0 %vm2524_vm1, %v2522_v9 }
 0x74f   :  { %v985_v13 = vsel %vm2660_vm3, %v981_v12, -1e+30  ;;  %v2257_v14 = vpop.f32.mrb[13].mxu1  ;;  %2263 = vmatprep.subr.mxu0 %v2522_v9 }
 0x750   :  { %v986_v15 = vsel %vm202_vm2, %v985_v13, -inf }
 0x751   :  { %987 = vmax.xlane.f32.xlu1 %v986_v15 }
 0x762   :  { %174 = vrot.lane.b32.xlu1 %v169_v16, %s2521_s3 }
 0x7de   :  { %v988_v17 = vpop.xlane.xlu1 %987 }
 0x7df   :  { %v989_v18 = vsub.f32 %v985_v13, %v988_v17 }
 0x7e1   :  { %v990_v19 = vmul.f32 1.442695, %v989_v18 }
 0x7e2   :  { %v175_v20 = vpop.permute.xlu1 %174 }
 0x7e3   :  { %2377 = vpow2.f32 %v990_v19  ;;  %v179_v21 = vmul.f32 %v2644_v11, %v175_v20 }
 0x7e5   :  { %184 = vrot.lane.b32.xlu0 %v179_v21, %s2521_s3 }
 0x7ed   :  { %v2378_v22 = vpop.eup %2377 }
 0x7ee   :  { %2261 = vmatmul.mubr.msk.f32.vlgmr.msra.gmra.mrb[4].mxu0 %vm202_vm2, %v2378_v22  ;;  %v992_v24 = vsel %vm202_vm2, %v2378_v22, 0.0 }
 0x7ef   :  { %993 = vadd.xlane.f32.xlu1 %v992_v24  ;;  %2265 = vmatprep.mubr.msk.f32.mxu0 %vm2524_vm1, %v2522_v9 }
 0x7f0   :  { %2264 = vmatpush3.msra.mxu0 %v2746_v25 }
 0x7f1   :  { %2278 = vmatprep.subr.mxu0 %v2522_v9 }
 0x800   :  { %1233 = vrot.lane.b32.xlu1 %v2644_v11, %s2523_s18 }
 0x857   :  { %v185_v28 = vpop.permute.xlu0 %184 }
 0x858   :  { %v189_v29 = vadd.f32 %v185_v28, %v167_v27 }
 0x85a   :  { %1146 = vrot.lane.b32.xlu0 %v189_v29, %s2526_s20 }
 0x85e   :  { %1311 = vrot.lane.b32.xlu0 %v189_v29, %s2525_s19 }
 0x87c   :  { %v994_v30 = vpop.xlane.xlu1 %993 }
 0x87d   :  { %2379 = vrcp.f32 %v994_v30 }
 0x880   :  { %v1234_v36 = vpop.permute.xlu1 %1233 }
 0x887   :  { %v2380_v31 = vpop.eup %2379 }
 0x8c1   :  { %v1064_v32 = vpop.f32.mrb[4].mxu0 }
 0x8c2   :  { %v1069_v33 = vmul.f32 %v2380_v31, %v1064_v32  ;;  %v2262_v34 = vpop.f32.mrb[5].mxu0 }
 0x8c4   :  { %2266 = vmatmul.mubr.msk.f32.vlgmr.msra.gmra.mrb[2].mxu0 %vm202_vm2, %v1069_v33 }
 0x8c5   :  { %2280 = vmatprep.mubr.msk.f32.mxu0 %vm2524_vm1, %v2522_v9 }
 0x8cc   :  { %v1147_v35 = vpop.permute.xlu0 %1146 }
 0x8cd   :  { %2269 = vmatpush3.xpose.msk.msra.mxu1 %vm202_vm2, %v1147_v35  ;;  %2279 = vmatpush3.xpose.msk.msra.mxu0 %vm202_vm2, %v1147_v35 }
 0x8ce   :  { %2273 = vmatprep.subr.mxu1 %v2522_v9  ;;  %2288 = vmatprep.subr.mxu0 %v2522_v9 }
 0x8d0   :  { %2271 = vmatmul.mubr.msk.f32.vlgmr.msra.gmra.mrb[14].mxu1 %vm202_vm2, %v189_v29  ;;  %v1312_v37 = vpop.permute.xlu0 %1311 }
 0x8d1   :  { %2274 = vmatpush3.msra.mxu1 %v1234_v36  ;;  %2281 = vmatmul.mubr.msk.f32.vlgmr.msra.gmra.mrb[6].mxu0 %vm202_vm2, %v1312_v37 }
 0x8d2   :  { %2275 = vmatprep.mubr.msk.f32.mxu1 %vm2524_vm1, %v2522_v9  ;;  %2283 = vmatprep.subr.mxu1 %v2522_v9 }
 0x8d3   :  { %2289 = vmatpush3.msra.mxu0 %v2695_v47  ;;  %2290 = vmatprep.mubr.msk.f32.mxu0 %vm2524_vm1, %v2522_v9 }
 0x8d4   :  { %2293 = vmatprep.subr.mxu0 %v2522_v9 }
 0x997   :  { %v1139_v38 = vpop.f32.mrb[2].mxu0 }
 0x998   :  { %1144 = vst.msk [vmem:[#allocation10] sm:$0xff] %vm82_vm0, %v1139_v38  ;;  %v2267_v39 = vpop.f32.mrb[3].mxu0 }
 0x9a3   :  { %v1218_v40 = vpop.f32.mrb[14].mxu1 }
 0x9a4   :  { %v1222_v41 = vsel %vm2660_vm3, %v1218_v40, -1e+30  ;;  %v2272_v42 = vpop.f32.mrb[15].mxu1  ;;  %v1381_v43 = vpop.f32.mrb[6].mxu0 }
 0x9a5   :  { %v1385_v44 = vsel %vm2660_vm3, %v1381_v43, -1e+30  ;;  %v2282_v45 = vpop.f32.mrb[7].mxu0  ;;  %v1223_v46 = vsel %vm202_vm2, %v1222_v41, -inf }
 0x9a6   :  { %1224 = vmax.xlane.f32.xlu0 %v1223_v46  ;;  %v1386_v47 = vsel %vm202_vm2, %v1385_v44, -inf }
 0x9a7   :  { %1387 = vmax.xlane.f32.xlu1 %v1386_v47 }
 0x9b8   :  { %1616 = vrot.lane.b32.xlu1 %v189_v29, %s2528_s23 }
 0x9bc   :  { %1618 = vrot.lane.b32.xlu0 %v189_v29, %s2527_s22 }
 0x9c0   :  { %1704 = vrot.lane.b32.xlu0 %v2644_v11, %s2529_s24 }
 0x9c4   :  { %1856 = vrot.lane.b32.xlu0 %v189_v29, %s2530_s25 }
 0xa33   :  { %v1225_v48 = vpop.xlane.xlu0 %1224 }
 0xa34   :  { %v1226_v49 = vsub.f32 %v1222_v41, %v1225_v48  ;;  %v1388_v50 = vpop.xlane.xlu1 %1387 }
 0xa35   :  { %v1389_v51 = vsub.f32 %v1385_v44, %v1388_v50 }
 0xa36   :  { %v1227_v52 = vmul.f32 1.442695, %v1226_v49 }
 0xa37   :  { %v1390_v53 = vmul.f32 1.442695, %v1389_v51  ;;  %v1619_v11 = vpop.permute.xlu0 %1618 }
 0xa38   :  { %2381 = vpow2.f32 %v1227_v52  ;;  %v1617_v57 = vpop.permute.xlu1 %1616 }
 0xa39   :  { %2383 = vpow2.f32 %v1390_v53 }
 0xa3b   :  { %v1705_v58 = vpop.permute.xlu0 %1704 }
 0xa3f   :  { %v1857_v60 = vpop.permute.xlu0 %1856 }
 0xa42   :  { %v2382_v54 = vpop.eup %2381 }
 0xa43   :  { %v2384_v55 = vpop.eup %2383  ;;  %2276 = vmatmul.mubr.msk.f32.vlgmr.msra.gmra.mrb[16].mxu1 %vm202_vm2, %v2382_v54  ;;  %v1229_v10 = vsel %vm202_vm2, %v2382_v54, 0.0 }
 0xa44   :  { %2284 = vmatpush3.msra.mxu1 %v1234_v36  ;;  %v1392_v56 = vsel %vm202_vm2, %v2384_v55, 0.0  ;;  %2285 = vmatprep.mubr.msk.f32.mxu1 %vm2524_vm1, %v2522_v9 }
 0xa45   :  { %1393 = vadd.xlane.f32.xlu0 %v1392_v56  ;;  %2298 = vmatprep.subr.mxu1 %v2522_v9 }
 0xa47   :  { %2286 = vmatmul.mubr.msk.f32.vlgmr.msra.gmra.mrb[18].mxu1 %vm202_vm2, %v2384_v55 }
 0xa48   :  { %2300 = vmatprep.mubr.msk.f32.mxu1 %vm2524_vm1, %v2522_v9 }
 0xa4b   :  { %2299 = vmatpush3.xpose.msk.msra.mxu1 %vm202_vm2, %v1619_v11 }
 0xa4c   :  { %2303 = vmatprep.subr.mxu1 %v2522_v9 }
 0xa4e   :  { %2301 = vmatmul.mubr.msk.f32.vlgmr.msra.gmra.mrb[20].mxu1 %vm202_vm2, %v1617_v57 }
 0xa4f   :  { %2304 = vmatpush3.msra.mxu1 %v1705_v58  ;;  %2305 = vmatprep.mubr.msk.f32.mxu1 %vm2524_vm1, %v2522_v9 }
 0xa50   :  { %2313 = vmatprep.subr.mxu1 %v2522_v9 }
 0xad2   :  { %v1394_v61 = vpop.xlane.xlu0 %1393 }
 0xad3   :  { %2385 = vrcp.f32 %v1394_v61 }
 0xadd   :  { %v2386_v0 = vpop.eup %2385 }
 0xb16   :  { %v1305_v62 = vpop.f32.mrb[16].mxu1 }
 0xb17   :  { %v2277_v63 = vpop.f32.mrb[17].mxu1 }
 0xb1a   :  { %v1464_v1 = vpop.f32.mrb[18].mxu1 }
 0xb1b   :  { %v1469_v2 = vmul.f32 %v2386_v0, %v1464_v1  ;;  %v2287_v3 = vpop.f32.mrb[19].mxu1 }
 0xb1d   :  { %2291 = vmatmul.mubr.msk.f32.vlgmr.msra.gmra.mrb[8].mxu0 %vm202_vm2, %v1469_v2 }
 0xb1e   :  { %2294 = vmatpush3.msra.mxu0 %v2706_v59  ;;  %2295 = vmatprep.mubr.msk.f32.mxu0 %vm2524_vm1, %v2522_v9 }
 0xb1f   :  { %2308 = vmatprep.subr.mxu0 %v2522_v9 }
 0xb21   :  { %v1690_v5 = vpop.f32.mrb[20].mxu1 }
 0xb22   :  { %v1694_v6 = vsel %vm2660_vm3, %v1690_v5, -1e+30  ;;  %v2302_v7 = vpop.f32.mrb[21].mxu1 }
 0xb23   :  { %v1695_v8 = vsel %vm202_vm2, %v1694_v6, -inf }
 0xb24   :  { %1696 = vmax.xlane.f32.xlu1 %v1695_v8 }
 0xb28   :  { %1230 = vadd.xlane.f32.xlu1 %v1229_v10 }
 0xbb1   :  { %v1697_v12 = vpop.xlane.xlu1 %1696 }
 0xbb2   :  { %v1698_v13 = vsub.f32 %v1694_v6, %v1697_v12 }
 0xbb4   :  { %v1699_v14 = vmul.f32 1.442695, %v1698_v13 }
 0xbb5   :  { %v1231_v59 = vpop.xlane.xlu1 %1230 }
 0xbb6   :  { %2387 = vpow2.f32 %v1699_v14 }
 0xbb7   :  { %2389 = vrcp.f32 %v1231_v59 }
 0xbc0   :  { %v2388_v15 = vpop.eup %2387 }
 0xbc1   :  { %v2390_v16 = vpop.eup %2389  ;;  %2306 = vmatmul.mubr.msk.f32.vlgmr.msra.gmra.mrb[22].mxu1 %vm202_vm2, %v2388_v15  ;;  %v1701_v17 = vsel %vm202_vm2, %v2388_v15, 0.0 }
 0xbc2   :  { %v1310_v18 = vmul.f32 %v2390_v16, %v1305_v62  ;;  %2314 = vmatpush3.xpose.msk.msra.mxu1 %vm202_vm2, %v1619_v11  ;;  %1702 = vadd.xlane.f32.xlu1 %v1701_v17 }
 0xbc3   :  { %2315 = vmatprep.mubr.msk.f32.mxu1 %vm2524_vm1, %v2522_v9 }
 0xbc4   :  { %2296 = vmatmul.mubr.msk.f32.vlgmr.msra.gmra.mrb[8].mxu0 %vm202_vm2, %v1310_v18 }
 0xbc5   :  { %2316 = vmatmul.mubr.msk.f32.vlgmr.msra.gmra.mrb[24].mxu1 %vm202_vm2, %v1857_v60  ;;  %2309 = vmatpush3.msra.mxu0 %v2723_v4 }
 0xbc6   :  { %2310 = vmatprep.mubr.msk.f32.mxu0 %vm2524_vm1, %v2522_v9  ;;  %2318 = vmatprep.subr.mxu0 %v2522_v9 }
 0xc4f   :  { %v1703_v19 = vpop.xlane.xlu1 %1702 }
 0xc50   :  { %2391 = vrcp.f32 %v1703_v19 }
 0xc5a   :  { %v2392_v20 = vpop.eup %2391 }
 0xc94   :  { %v1776_v21 = vpop.f32.mrb[22].mxu1 }
 0xc95   :  { %v1781_v22 = vmul.f32 %v2392_v20, %v1776_v21  ;;  %v2307_v24 = vpop.f32.mrb[23].mxu1 }
 0xc97   :  { %2311 = vmatmul.mubr.msk.f32.vlgmr.msra.gmra.mrb[8].mxu0 %vm202_vm2, %v1781_v22 }
 0xc98   :  { %2319 = vmatpush3.msra.mxu0 %v1705_v58  ;;  %v1926_v26 = vpop.f32.mrb[24].mxu1  ;;  %2320 = vmatprep.mubr.msk.f32.mxu0 %vm2524_vm1, %v2522_v9 }
 0xc99   :  { %v1930_v4 = vsel %vm2660_vm3, %v1926_v26, -1e+30  ;;  %v2317_v27 = vpop.f32.mrb[25].mxu1  ;;  %2323 = vmatprep.subr.mxu0 %v2522_v9 }
 0xc9a   :  { %v1931_v28 = vsel %vm202_vm2, %v1930_v4, -inf }
 0xc9b   :  { %1932 = vmax.xlane.f32.xlu1 %v1931_v28 }
 0xd28   :  { %v1933_v29 = vpop.xlane.xlu1 %1932 }
 0xd29   :  { %v1934_v30 = vsub.f32 %v1930_v4, %v1933_v29 }
 0xd2b   :  { %v1935_v31 = vmul.f32 1.442695, %v1934_v30 }
 0xd2d   :  { %2393 = vpow2.f32 %v1935_v31 }
 0xd37   :  { %v2394_v32 = vpop.eup %2393 }
 0xd38   :  { %2321 = vmatmul.mubr.msk.f32.vlgmr.msra.gmra.mrb[10].mxu0 %vm202_vm2, %v2394_v32  ;;  %v1937_v33 = vsel %vm202_vm2, %v2394_v32, 0.0 }
 0xd39   :  { %1938 = vadd.xlane.f32.xlu0 %v1937_v33  ;;  %2324 = vmatpush3.msra.mxu0 %v2746_v25 }
 0xd3a   :  { %2325 = vmatprep.mubr.msk.f32.mxu0 %vm2524_vm1, %v2522_v9 }
 0xdc6   :  { %v1939_v23 = vpop.xlane.xlu0 %1938 }
 0xdc7   :  { %2395 = vrcp.f32 %v1939_v23 }
 0xdd1   :  { %v2396_v34 = vpop.eup %2395 }
 0xe0b   :  { %v2009_v35 = vpop.f32.mrb[10].mxu0 }
 0xe0c   :  { %v2014_v36 = vmul.f32 %v2396_v34, %v2009_v35  ;;  %v2322_v37 = vpop.f32.mrb[11].mxu0 }
 0xe0e   :  { %2326 = vmatmul.mubr.msk.f32.vlgmr.msra.gmra.mrb[8].mxu0 %vm202_vm2, %v2014_v36 }
 0xee1   :  { %v2084_v38 = vpop.f32.mrb[8].mxu0 }
 0xee2   :  { %2089 = vst.msk [vmem:[#allocation10 + $0x8] sm:$0xff] %vm82_vm0, %v2084_v38  ;;  %v2327_v39 = vpop.f32.mrb[9].mxu0 }
 0xee3   :  { %2496 = shalt.err (!%p2493_p8)
}
 0xee4   :  { %s2497_s7 = scalar_lea.hbm %s2849_s5, 256 }
 0xee5   :  { %p2498_p9 = scmp.ne.s32.totalorder %s2849_s5, %s2497_s7  ;;  %p2501_p10 = scmp.lt.u32.totalorder %s2497_s7, %s2849_s5 }
 0xee7   :  { %p2503_p11 = pnand %p2501_p10, %p2498_p9 }
 0xee9   :  { %2506 = shalt.err (!%p2503_p11)
}
 0xeea   :  { %2101 = dma.vmem_to_hbm [thread:$0]  %s2096_s28, 256, %s2849_s5, [#allocation4], %s2517_s30, %s2517_s30, %s2518_s6  }
 0xeeb   :  { %2513 = dma.done.wait [#allocation4], 256  }
 0xeec   :  { %2514 = vsyncadd [#allocation4], 4294967040 }
 0xeed   :  { %2105 = vsyncpa [#allocation3], 1 }
 0xeee   :  { %2106 = vsyncpa [#allocation6], 1 }
 0xeef   :  { %2107 = vsyncpa [#allocation9], 1 }
 0xef0   :  { %2108 = vsyncpa [#allocation4], 1 }

</bundles_post_ra>
